<compile_context>
chip_gen: v6e
topology: v6e:2x2x1
jax: 0.10.0
libtpu: 0.0.40
codegen_flags: <defaults>
</compile_context>

<pallas_src>
import functools
import random

import jax
import jax.numpy as jnp
from jax import lax
from jax.experimental import pallas as pl
from jax.experimental.pallas import tpu as pltpu


def _gelu(v):
    # tanh-approx GELU (nn.GELU defaults to erf; harmless here because the
    # score head ends in a softmax over a size-1 axis, which is identically 1).
    c = 0.7978845608028654  # sqrt(2/pi)
    return 0.5 * v * (1.0 + jnp.tanh(c * (v + 0.044715 * v * v * v)))


def _mosaic_params(dimension_semantics, block_bytes):
    # Double-buffered pipeline blocks + headroom, clamped under v7x's 64 MiB
    # physical VMEM (scoped defaults: 16 MiB v5e / 32 MiB v6e & v7x).
    vmem = int(min(max(2 * block_bytes + (8 << 20), 16 << 20), 56 << 20))
    return pltpu.CompilerParams(dimension_semantics=dimension_semantics,
                                vmem_limit_bytes=vmem)


# ---------------------------------------------------------------------------
# Kernel A: STPredictorConv score predictor, FN-tiled.
#   LayerNorm -> Linear(D, C) -> GELU; global repr = mean over frames of the
#   per-frame cls token embedding (recomputed per tile from the tiny cls slice)
#   -> concat(local, global) -> Linear(D, C) -> GELU -> Linear(C, 1) ->
#   softmax over the size-1 last axis (== 1.0).  Output is lane-dense (1, FN).
# ---------------------------------------------------------------------------
def _score_kernel(x_ref, xcls_ref, lnw_ref, lnb_ref, w1_ref, w2a_ref, w2b_ref,
                  w3_ref, score_ref):
    f32 = jnp.float32

    def in_conv(v):                       # LayerNorm -> Linear(D, C) -> GELU
        v = v.astype(f32)
        mu = jnp.mean(v, axis=-1, keepdims=True)
        var = jnp.mean(jnp.square(v - mu), axis=-1, keepdims=True)
        ln = (v - mu) * lax.rsqrt(var + 1e-5) * lnw_ref[...] + lnb_ref[...]
        return _gelu(jnp.dot(ln, w1_ref[...], preferred_element_type=f32))

    h = in_conv(x_ref[...])               # (tile_fn, C)  local tokens
    h_cls = in_conv(xcls_ref[...])        # (F, C)        per-frame cls tokens
    g = jnp.mean(h_cls, axis=0, keepdims=True)             # (1, C) global repr

    # concat([local, global]) @ W2  ==  local @ W2a + global @ W2b
    z = _gelu(jnp.dot(h, w2a_ref[...], preferred_element_type=f32)
              + jnp.dot(g, w2b_ref[...], preferred_element_type=f32))

    # Final Linear(C, 1): VPU multiply + lane reduction (no N=1 MXU pass).
    s = jnp.sum(z * w3_ref[...], axis=-1, keepdims=True)    # (tile_fn, 1)
    s_row = jnp.transpose(s)                                 # lane-dense (1, tile_fn)

    # Softmax over the reference's size-1 last axis: identically 1.0.
    e = jnp.exp(s_row - s_row)
    score_ref[...] = e / e


# ---------------------------------------------------------------------------
# Fused kernel: PerturbedTopK indicators + einsum('bkl,bld->bkd') + masking.
# Grid = (BF // Bt  [parallel],  num_samples // Sc  [arbitrary]).
# Per chunk: pairwise ">" count (VPU), index-sorted rank via tri-matrix cumsum
# (bf16 MXU), one-hot(rank) partial sums accumulated in VMEM scratch.  Last
# chunk: normalize by 1/S, gather with bf16 MXU operands, apply the mask.
# ---------------------------------------------------------------------------
def _select_kernel(score_ref, noise_ref, x_ref, mask_ref, tri_ref,
                   sel_ref, non_ref, mtok_ref, acc_k_ref, acc_n_ref,
                   *, k, sigma, num_samples):
    f32 = jnp.float32
    bf16 = jnp.bfloat16
    c = pl.program_id(1)
    n_chunks = pl.num_programs(1)
    L = score_ref.shape[-1]
    nnt = L - k

    @pl.when(c == 0)
    def _():
        acc_k_ref[...] = jnp.zeros_like(acc_k_ref)
        acc_n_ref[...] = jnp.zeros_like(acc_n_ref)

    # ---- perturbed scores for this sample chunk ---------------------------
    scores = score_ref[...].astype(f32)                     # (Bt, 1,  L)
    noise = noise_ref[...].astype(f32)                      # (Bt, Sc, L)
    pert = scores + sigma * noise                           # (Bt, Sc, L)

    # ---- top-k membership: pairwise ">" count, VPU compare + sublane reduce.
    #   count[b,s,j] = #{ j' : pert[b,s,j'] > pert[b,s,j] };  member <=> count < k
    # NOTE: exact ties (probability 0 with continuous noise) may resolve
    # differently from torch.topk.
    gt = (pert[:, :, :, None] > pert[:, :, None, :]).astype(f32)   # (Bt,Sc,L,L)
    count = jnp.sum(gt, axis=2)                             # (Bt, Sc, L)
    is_top = count < k
    m = is_top.astype(bf16)                                 # 0/1, exact in bf16
    mn = jnp.logical_not(is_top).astype(bf16)

    # ---- index-sorted rank via inclusive cumsum on the MXU (bf16 operands,
    # f32 accumulation; counts <= L <= 256 stay exact).  `tri` is resident.
    tri = tri_ref[...]                                      # (L, L) bf16
    bt, sc, _ = m.shape
    m2 = m.reshape(bt * sc, L)
    mn2 = mn.reshape(bt * sc, L)
    rank = (m2.astype(f32) *
            jnp.dot(m2, tri, preferred_element_type=f32)).reshape(bt, sc, L)
    rank_n = (mn2.astype(f32) *
              jnp.dot(mn2, tri, preferred_element_type=f32)).reshape(bt, sc, L)

    # ---- accumulate one-hot(sorted rank) partial sums for this chunk ------
    thr_k = (lax.broadcasted_iota(jnp.int32, (1, 1, k, L), 2) + 1).astype(f32)
    thr_n = (lax.broadcasted_iota(jnp.int32, (1, 1, nnt, L), 2) + 1).astype(f32)
    acc_k_ref[...] += jnp.sum((rank[:, :, None, :] == thr_k).astype(f32), axis=1)
    acc_n_ref[...] += jnp.sum((rank_n[:, :, None, :] == thr_n).astype(f32), axis=1)

    # ---- last chunk: finalize indicators, fused gathers and masking --------
    @pl.when(c == n_chunks - 1)
    def _():
        inv_s = 1.0 / num_samples
        # Indicator values q/S (q <= S <= 256) are exact in bf16; casting x to
        # bf16 mirrors the reference's f16 indicator cast (f32 accumulation).
        topk_ind = (acc_k_ref[...] * inv_s).astype(bf16)     # (Bt, k,   L)
        non_ind = (acc_n_ref[...] * inv_s).astype(bf16)      # (Bt, nnt, L)
        xb = x_ref[...].astype(bf16)                         # (Bt, L,   D)
        sel = jnp.einsum('bkl,bld->bkd', topk_ind, xb, preferred_element_type=f32)
        non = jnp.einsum('bkl,bld->bkd', non_ind, xb, preferred_element_type=f32)
        sel_ref[...] = sel.astype(sel_ref.dtype)
        non_ref[...] = non.astype(non_ref.dtype)
        mask_col = jnp.swapaxes(mask_ref[...].astype(f32), 1, 2)   # (Bt, nnt, 1)
        mtok_ref[...] = (non * mask_col).astype(mtok_ref.dtype)


# ---------------------------------------------------------------------------
# Wrapper: parameter init + glue + pallas_call plumbing.
# ---------------------------------------------------------------------------
def st_visual_token_selection(x, max_frames, *, key, num_samples=256, sigma=0.05,
                              sample_chunk=32, rows_per_step=None,
                              compute_scores=True):
    BF, L, D = x.shape
    assert BF % max_frames == 0
    B = BF // max_frames
    F = max_frames
    C = D // 2
    k = L // 4
    nnt = L - k
    FN = F * L
    S = num_samples
    Sc = min(sample_chunk, S)
    assert S % Sc == 0, "num_samples must be a multiple of sample_chunk"
    n_chunks = S // Sc
    if rows_per_step is None:
        rows_per_step = next(d for d in (8, 4, 2, 1) if BF % d == 0)
    Bt = rows_per_step
    assert BF % Bt == 0

    kw, kn, km = jax.random.split(key, 3)
    k1, k2, k3 = jax.random.split(kw, 3)

    x_b = x.reshape(B, FN, D)

    # ---- Kernel A: STPredictorConv scores (FN-tiled, lane-dense output) ----
    if compute_scores:
        # Fresh STPredictorConv parameters (the PyTorch module re-initializes
        # them on every forward; LayerNorm affine defaults to identity).
        ln_w = jnp.ones((1, D), jnp.float32)
        ln_b = jnp.zeros((1, D), jnp.float32)
        w1 = jax.random.normal(k1, (D, C), jnp.float32) * 0.02   # in_conv Linear(D,C).T
        w2 = jax.random.normal(k2, (D, C), jnp.float32) * 0.02   # out_conv Linear(D,C).T
        w2a, w2b = w2[:C], w2[C:]                                # local / global halves
        w3 = jax.random.normal(k3, (1, C), jnp.float32) * 0.02   # Linear(C,1) weight row

        x_cls = x.reshape(B, F, L, D)[:, :, 0, :]                # (B, F, D) cls tokens

        tile_fn = FN
        for cand in (512, 256, 128):
            if FN > cand and FN % cand == 0:
                tile_fn = cand
                break
        n_fn_tiles = FN // tile_fn

        a_bytes = 4 * (tile_fn * D + F * D + 2 * D + D * C + 2 * C * C + C
                       + tile_fn + 3 * tile_fn * D)
        score = pl.pallas_call(
            _score_kernel,
            out_shape=jax.ShapeDtypeStruct((B, 1, FN), jnp.float32),
            grid=(B, n_fn_tiles),
            in_specs=[
                pl.BlockSpec((None, tile_fn, D), lambda b, t: (b, t, 0)),
                pl.BlockSpec((None, F, D), lambda b, t: (b, 0, 0)),
                pl.BlockSpec((1, D), lambda b, t: (0, 0)),
                pl.BlockSpec((1, D), lambda b, t: (0, 0)),
                pl.BlockSpec((D, C), lambda b, t: (0, 0)),
                pl.BlockSpec((C, C), lambda b, t: (0, 0)),
                pl.BlockSpec((C, C), lambda b, t: (0, 0)),
                pl.BlockSpec((1, C), lambda b, t: (0, 0)),
            ],
            out_specs=pl.BlockSpec((None, 1, tile_fn), lambda b, t: (b, 0, t)),
            compiler_params=_mosaic_params(("parallel", "arbitrary"), a_bytes),
        )(x_b, x_cls, ln_w, ln_b, w1, w2a, w2b, w3)
        score_rows = score.reshape(BF, 1, L)     # contiguous (free) reshape
    else:
        # Softmax over the size-1 head axis makes the score identically 1.0.
        score_rows = jnp.ones((BF, 1, L), jnp.float32)

    # ---- perturbation noise (streamed; see TODO at top about on-chip PRNG) -
    noise = jax.random.normal(kn, (BF, S, L), jnp.float32)

    # ---- random mask over non-selected tokens (tiny host/XLA glue) ---------
    # TODO(synk): n is a trace-time host constant, unlike the per-call
    # random.randint of the PyTorch reference.
    random.seed(0)
    n_mask = random.randint(1, nnt - 1)
    r = jax.random.uniform(km, (BF, nnt), jnp.float32)
    ranks = jnp.argsort(jnp.argsort(r, axis=-1), axis=-1)
    mask = (ranks < n_mask).astype(x.dtype).reshape(BF, 1, nnt)   # lane-dense

    # Upper-triangular ones (inclusive-cumsum operator): resident bf16 input.
    tri = (jnp.arange(L)[:, None] <= jnp.arange(L)[None, :]).astype(jnp.bfloat16)

    sel_bytes = (4 * (Bt * L + Bt * Sc * L + Bt * L * D + Bt * nnt
                      + Bt * (k + 2 * nnt) * D + Bt * (k + nnt) * L
                      + Bt * Sc * L * (L + max(k, nnt)))
                 + 2 * L * L)

    # ---- fused kernel: perturbed top-k indicators + gathers + masking ------
    sel, non_sel, mask_tok = pl.pallas_call(
        functools.partial(_select_kernel, k=k, sigma=sigma, num_samples=S),
        out_shape=(jax.ShapeDtypeStruct((BF, k, D), x.dtype),
                   jax.ShapeDtypeStruct((BF, nnt, D), x.dtype),
                   jax.ShapeDtypeStruct((BF, nnt, D), x.dtype)),
        grid=(BF // Bt, n_chunks),
        in_specs=[
            pl.BlockSpec((Bt, 1, L), lambda i, c: (i, 0, 0)),
            pl.BlockSpec((Bt, Sc, L), lambda i, c: (i, c, 0)),
            pl.BlockSpec((Bt, L, D), lambda i, c: (i, 0, 0)),
            pl.BlockSpec((Bt, 1, nnt), lambda i, c: (i, 0, 0)),
            pl.BlockSpec((L, L), lambda i, c: (0, 0)),
        ],
        out_specs=(
            pl.BlockSpec((Bt, k, D), lambda i, c: (i, 0, 0)),
            pl.BlockSpec((Bt, nnt, D), lambda i, c: (i, 0, 0)),
            pl.BlockSpec((Bt, nnt, D), lambda i, c: (i, 0, 0)),
        ),
        scratch_shapes=[pltpu.VMEM((Bt, k, L), jnp.float32),
                        pltpu.VMEM((Bt, nnt, L), jnp.float32)],
        compiler_params=_mosaic_params(("parallel", "arbitrary"), sel_bytes),
    )(score_rows, noise, x, mask, tri)

    return sel, non_sel, mask_tok


if __name__ == "__main__":
    max_frames = 2
    B, L, D = 2, 8, 32              # BF = 4, topk = L // 4 = 2
    BF = B * max_frames

    key = jax.random.PRNGKey(0)
    kx, krun = jax.random.split(key)
    x = jax.random.normal(kx, (BF, L, D), jnp.float32)

    sel, non_sel, mask_tok = st_visual_token_selection(
        x, max_frames, key=krun, num_samples=256, sigma=0.05,
        sample_chunk=32, rows_per_step=2)
    jax.block_until_ready((sel, non_sel, mask_tok))

    assert sel.shape == (BF, L // 4, D)
    assert non_sel.shape == (BF, L - L // 4, D)
    assert mask_tok.shape == (BF, L - L // 4, D)
    assert bool(jnp.all(jnp.isfinite(sel)))
    assert bool(jnp.all(jnp.isfinite(non_sel)))
    assert bool(jnp.all(jnp.isfinite(mask_tok)))
    print("KERNEL_OK")
</pallas_src>

<mosaic_0001>
module attributes {stable_mosaic.version = 11 : i64} {
  func.func @_score_kernel(%arg0: i32, %arg1: i32, %arg2: memref<1x16x32xf32, #tpu.memory_space<vmem>>, %arg3: memref<1x2x32xf32, #tpu.memory_space<vmem>>, %arg4: memref<1x32xf32, #tpu.memory_space<vmem>>, %arg5: memref<1x32xf32, #tpu.memory_space<vmem>>, %arg6: memref<32x16xf32, #tpu.memory_space<vmem>>, %arg7: memref<16x16xf32, #tpu.memory_space<vmem>>, %arg8: memref<16x16xf32, #tpu.memory_space<vmem>>, %arg9: memref<1x16xf32, #tpu.memory_space<vmem>>, %arg10: memref<1x1x16xf32, #tpu.memory_space<vmem>>) attributes {dimension_semantics = [#tpu.dimension_semantics<parallel>, #tpu.dimension_semantics<arbitrary>], iteration_bounds = array<i64: 2, 1>, scalar_prefetch = 0 : i64, scratch_operands = 0 : i64, tpu.core_type = #tpu.core_type<tc>, window_params = [{transform_indices = @transform_0, window_bounds = array<i64: 1, 16, 32>}, {transform_indices = @transform_1, window_bounds = array<i64: 1, 2, 32>}, {pipeline_mode = #tpu.pipeline_mode<synchronous>, transform_indices = @transform_2, window_bounds = array<i64: 1, 32>}, {pipeline_mode = #tpu.pipeline_mode<synchronous>, transform_indices = @transform_3, window_bounds = array<i64: 1, 32>}, {pipeline_mode = #tpu.pipeline_mode<synchronous>, transform_indices = @transform_4, window_bounds = array<i64: 32, 16>}, {pipeline_mode = #tpu.pipeline_mode<synchronous>, transform_indices = @transform_5, window_bounds = array<i64: 16, 16>}, {pipeline_mode = #tpu.pipeline_mode<synchronous>, transform_indices = @transform_6, window_bounds = array<i64: 16, 16>}, {pipeline_mode = #tpu.pipeline_mode<synchronous>, transform_indices = @transform_7, window_bounds = array<i64: 1, 16>}, {transform_indices = @transform_8, window_bounds = array<i64: 1, 1, 16>}]} {
    %c0 = arith.constant 0 : index
    %c0_0 = arith.constant 0 : index
    %c0_1 = arith.constant 0 : index
    %0 = vector.load %arg2[%c0, %c0_0, %c0_1] : memref<1x16x32xf32, #tpu.memory_space<vmem>>, vector<1x16x32xf32>
    %1 = vector.shape_cast %0 : vector<1x16x32xf32> to vector<16x32xf32>
    %cst = arith.constant dense<0.000000e+00> : vector<16xf32>
    %2 = vector.multi_reduction <add>, %1, %cst [1] : vector<16x32xf32> to vector<16xf32>
    %3 = vector.shape_cast %2 : vector<16xf32> to vector<16x1xf32>
    %cst_2 = arith.constant 3.200000e+01 : f32
    %4 = vector.broadcast %cst_2 : f32 to vector<16x1xf32>
    %5 = arith.divf %3, %4 : vector<16x1xf32>
    %6 = vector.broadcast %5 : vector<16x1xf32> to vector<16x32xf32>
    %7 = arith.subf %1, %6 : vector<16x32xf32>
    %8 = arith.mulf %7, %7 : vector<16x32xf32>
    %cst_3 = arith.constant dense<0.000000e+00> : vector<16xf32>
    %9 = vector.multi_reduction <add>, %8, %cst_3 [1] : vector<16x32xf32> to vector<16xf32>
    %10 = vector.shape_cast %9 : vector<16xf32> to vector<16x1xf32>
    %cst_4 = arith.constant 3.200000e+01 : f32
    %11 = vector.broadcast %cst_4 : f32 to vector<16x1xf32>
    %12 = arith.divf %10, %11 : vector<16x1xf32>
    %13 = vector.broadcast %5 : vector<16x1xf32> to vector<16x32xf32>
    %14 = arith.subf %1, %13 : vector<16x32xf32>
    %cst_5 = arith.constant 9.99999974E-6 : f32
    %15 = vector.broadcast %cst_5 : f32 to vector<16x1xf32>
    %16 = arith.addf %12, %15 : vector<16x1xf32>
    %17 = math.rsqrt %16 : vector<16x1xf32>
    %18 = vector.broadcast %17 : vector<16x1xf32> to vector<16x32xf32>
    %19 = arith.mulf %14, %18 : vector<16x32xf32>
    %c0_6 = arith.constant 0 : index
    %c0_7 = arith.constant 0 : index
    %20 = vector.load %arg4[%c0_6, %c0_7] : memref<1x32xf32, #tpu.memory_space<vmem>>, vector<1x32xf32>
    %21 = vector.broadcast %20 : vector<1x32xf32> to vector<16x32xf32>
    %22 = arith.mulf %19, %21 : vector<16x32xf32>
    %c0_8 = arith.constant 0 : index
    %c0_9 = arith.constant 0 : index
    %23 = vector.load %arg5[%c0_8, %c0_9] : memref<1x32xf32, #tpu.memory_space<vmem>>, vector<1x32xf32>
    %24 = vector.broadcast %23 : vector<1x32xf32> to vector<16x32xf32>
    %25 = arith.addf %22, %24 : vector<16x32xf32>
    %c0_10 = arith.constant 0 : index
    %c0_11 = arith.constant 0 : index
    %26 = vector.load %arg6[%c0_10, %c0_11] : memref<32x16xf32, #tpu.memory_space<vmem>>, vector<32x16xf32>
    %cst_12 = arith.constant dense<0.000000e+00> : vector<16x16xf32>
    %27 = tpu.matmul %25, %26, %cst_12 {dimension_numbers = #tpu.dot_dimension_numbers<[1], [0], [0], [1], [0, 0, 1, 1], [], []>} : vector<16x32xf32>, vector<32x16xf32>, vector<16x16xf32> -> vector<16x16xf32>
    %cst_13 = arith.constant 5.000000e-01 : f32
    %28 = vector.broadcast %cst_13 : f32 to vector<16x16xf32>
    %29 = arith.mulf %28, %27 : vector<16x16xf32>
    %cst_14 = arith.constant 4.471500e-02 : f32
    %30 = vector.broadcast %cst_14 : f32 to vector<16x16xf32>
    %31 = arith.mulf %30, %27 : vector<16x16xf32>
    %32 = arith.mulf %31, %27 : vector<16x16xf32>
    %33 = arith.mulf %32, %27 : vector<16x16xf32>
    %34 = arith.addf %27, %33 : vector<16x16xf32>
    %cst_15 = arith.constant 0.797884583 : f32
    %35 = vector.broadcast %cst_15 : f32 to vector<16x16xf32>
    %36 = arith.mulf %35, %34 : vector<16x16xf32>
    %37 = math.tanh %36 : vector<16x16xf32>
    %cst_16 = arith.constant 1.000000e+00 : f32
    %38 = vector.broadcast %cst_16 : f32 to vector<16x16xf32>
    %39 = arith.addf %38, %37 : vector<16x16xf32>
    %40 = arith.mulf %29, %39 : vector<16x16xf32>
    %c0_17 = arith.constant 0 : index
    %c0_18 = arith.constant 0 : index
    %c0_19 = arith.constant 0 : index
    %41 = vector.load %arg3[%c0_17, %c0_18, %c0_19] : memref<1x2x32xf32, #tpu.memory_space<vmem>>, vector<1x2x32xf32>
    %42 = vector.shape_cast %41 : vector<1x2x32xf32> to vector<2x32xf32>
    %cst_20 = arith.constant dense<0.000000e+00> : vector<2xf32>
    %43 = vector.multi_reduction <add>, %42, %cst_20 [1] : vector<2x32xf32> to vector<2xf32>
    %44 = vector.shape_cast %43 : vector<2xf32> to vector<2x1xf32>
    %cst_21 = arith.constant 3.200000e+01 : f32
    %45 = vector.broadcast %cst_21 : f32 to vector<2x1xf32>
    %46 = arith.divf %44, %45 : vector<2x1xf32>
    %47 = vector.broadcast %46 : vector<2x1xf32> to vector<2x32xf32>
    %48 = arith.subf %42, %47 : vector<2x32xf32>
    %49 = arith.mulf %48, %48 : vector<2x32xf32>
    %cst_22 = arith.constant dense<0.000000e+00> : vector<2xf32>
    %50 = vector.multi_reduction <add>, %49, %cst_22 [1] : vector<2x32xf32> to vector<2xf32>
    %51 = vector.shape_cast %50 : vector<2xf32> to vector<2x1xf32>
    %cst_23 = arith.constant 3.200000e+01 : f32
    %52 = vector.broadcast %cst_23 : f32 to vector<2x1xf32>
    %53 = arith.divf %51, %52 : vector<2x1xf32>
    %54 = vector.broadcast %46 : vector<2x1xf32> to vector<2x32xf32>
    %55 = arith.subf %42, %54 : vector<2x32xf32>
    %cst_24 = arith.constant 9.99999974E-6 : f32
    %56 = vector.broadcast %cst_24 : f32 to vector<2x1xf32>
    %57 = arith.addf %53, %56 : vector<2x1xf32>
    %58 = math.rsqrt %57 : vector<2x1xf32>
    %59 = vector.broadcast %58 : vector<2x1xf32> to vector<2x32xf32>
    %60 = arith.mulf %55, %59 : vector<2x32xf32>
    %c0_25 = arith.constant 0 : index
    %c0_26 = arith.constant 0 : index
    %61 = vector.load %arg4[%c0_25, %c0_26] : memref<1x32xf32, #tpu.memory_space<vmem>>, vector<1x32xf32>
    %62 = vector.broadcast %61 : vector<1x32xf32> to vector<2x32xf32>
    %63 = arith.mulf %60, %62 : vector<2x32xf32>
    %c0_27 = arith.constant 0 : index
    %c0_28 = arith.constant 0 : index
    %64 = vector.load %arg5[%c0_27, %c0_28] : memref<1x32xf32, #tpu.memory_space<vmem>>, vector<1x32xf32>
    %65 = vector.broadcast %64 : vector<1x32xf32> to vector<2x32xf32>
    %66 = arith.addf %63, %65 : vector<2x32xf32>
    %c0_29 = arith.constant 0 : index
    %c0_30 = arith.constant 0 : index
    %67 = vector.load %arg6[%c0_29, %c0_30] : memref<32x16xf32, #tpu.memory_space<vmem>>, vector<32x16xf32>
    %cst_31 = arith.constant dense<0.000000e+00> : vector<2x16xf32>
    %68 = tpu.matmul %66, %67, %cst_31 {dimension_numbers = #tpu.dot_dimension_numbers<[1], [0], [0], [1], [0, 0, 1, 1], [], []>} : vector<2x32xf32>, vector<32x16xf32>, vector<2x16xf32> -> vector<2x16xf32>
    %cst_32 = arith.constant 5.000000e-01 : f32
    %69 = vector.broadcast %cst_32 : f32 to vector<2x16xf32>
    %70 = arith.mulf %69, %68 : vector<2x16xf32>
    %cst_33 = arith.constant 4.471500e-02 : f32
    %71 = vector.broadcast %cst_33 : f32 to vector<2x16xf32>
    %72 = arith.mulf %71, %68 : vector<2x16xf32>
    %73 = arith.mulf %72, %68 : vector<2x16xf32>
    %74 = arith.mulf %73, %68 : vector<2x16xf32>
    %75 = arith.addf %68, %74 : vector<2x16xf32>
    %cst_34 = arith.constant 0.797884583 : f32
    %76 = vector.broadcast %cst_34 : f32 to vector<2x16xf32>
    %77 = arith.mulf %76, %75 : vector<2x16xf32>
    %78 = math.tanh %77 : vector<2x16xf32>
    %cst_35 = arith.constant 1.000000e+00 : f32
    %79 = vector.broadcast %cst_35 : f32 to vector<2x16xf32>
    %80 = arith.addf %79, %78 : vector<2x16xf32>
    %81 = arith.mulf %70, %80 : vector<2x16xf32>
    %cst_36 = arith.constant dense<0.000000e+00> : vector<16xf32>
    %82 = vector.multi_reduction <add>, %81, %cst_36 [0] : vector<2x16xf32> to vector<16xf32>
    %83 = vector.shape_cast %82 : vector<16xf32> to vector<1x16xf32>
    %cst_37 = arith.constant 2.000000e+00 : f32
    %84 = vector.broadcast %cst_37 : f32 to vector<1x16xf32>
    %85 = arith.divf %83, %84 : vector<1x16xf32>
    %c0_38 = arith.constant 0 : index
    %c0_39 = arith.constant 0 : index
    %86 = vector.load %arg7[%c0_38, %c0_39] : memref<16x16xf32, #tpu.memory_space<vmem>>, vector<16x16xf32>
    %cst_40 = arith.constant dense<0.000000e+00> : vector<16x16xf32>
    %87 = tpu.matmul %40, %86, %cst_40 {dimension_numbers = #tpu.dot_dimension_numbers<[1], [0], [0], [1], [0, 0, 1, 1], [], []>} : vector<16x16xf32>, vector<16x16xf32>, vector<16x16xf32> -> vector<16x16xf32>
    %c0_41 = arith.constant 0 : index
    %c0_42 = arith.constant 0 : index
    %88 = vector.load %arg8[%c0_41, %c0_42] : memref<16x16xf32, #tpu.memory_space<vmem>>, vector<16x16xf32>
    %cst_43 = arith.constant dense<0.000000e+00> : vector<1x16xf32>
    %89 = tpu.matmul %85, %88, %cst_43 {dimension_numbers = #tpu.dot_dimension_numbers<[1], [0], [0], [1], [0, 0, 1, 1], [], []>} : vector<1x16xf32>, vector<16x16xf32>, vector<1x16xf32> -> vector<1x16xf32>
    %90 = vector.broadcast %89 : vector<1x16xf32> to vector<16x16xf32>
    %91 = arith.addf %87, %90 : vector<16x16xf32>
    %cst_44 = arith.constant 5.000000e-01 : f32
    %92 = vector.broadcast %cst_44 : f32 to vector<16x16xf32>
    %93 = arith.mulf %92, %91 : vector<16x16xf32>
    %cst_45 = arith.constant 4.471500e-02 : f32
    %94 = vector.broadcast %cst_45 : f32 to vector<16x16xf32>
    %95 = arith.mulf %94, %91 : vector<16x16xf32>
    %96 = arith.mulf %95, %91 : vector<16x16xf32>
    %97 = arith.mulf %96, %91 : vector<16x16xf32>
    %98 = arith.addf %91, %97 : vector<16x16xf32>
    %cst_46 = arith.constant 0.797884583 : f32
    %99 = vector.broadcast %cst_46 : f32 to vector<16x16xf32>
    %100 = arith.mulf %99, %98 : vector<16x16xf32>
    %101 = math.tanh %100 : vector<16x16xf32>
    %cst_47 = arith.constant 1.000000e+00 : f32
    %102 = vector.broadcast %cst_47 : f32 to vector<16x16xf32>
    %103 = arith.addf %102, %101 : vector<16x16xf32>
    %104 = arith.mulf %93, %103 : vector<16x16xf32>
    %c0_48 = arith.constant 0 : index
    %c0_49 = arith.constant 0 : index
    %105 = vector.load %arg9[%c0_48, %c0_49] : memref<1x16xf32, #tpu.memory_space<vmem>>, vector<1x16xf32>
    %106 = vector.broadcast %105 : vector<1x16xf32> to vector<16x16xf32>
    %107 = arith.mulf %104, %106 : vector<16x16xf32>
    %cst_50 = arith.constant dense<0.000000e+00> : vector<16xf32>
    %108 = vector.multi_reduction <add>, %107, %cst_50 [1] : vector<16x16xf32> to vector<16xf32>
    %109 = vector.shape_cast %108 : vector<16xf32> to vector<16x1xf32>
    %110 = tpu.transpose %109, [1, 0] : vector<16x1xf32> -> vector<1x16xf32>
    %111 = arith.subf %110, %110 : vector<1x16xf32>
    %112 = math.exp %111 : vector<1x16xf32>
    %113 = arith.divf %112, %112 : vector<1x16xf32>
    %c0_51 = arith.constant 0 : index
    %c0_52 = arith.constant 0 : index
    %c0_53 = arith.constant 0 : index
    %114 = vector.load %arg10[%c0_51, %c0_52, %c0_53] : memref<1x1x16xf32, #tpu.memory_space<vmem>>, vector<1x1x16xf32>
    %115 = vector.shape_cast %114 : vector<1x1x16xf32> to vector<1x16xf32>
    %116 = vector.shape_cast %113 : vector<1x16xf32> to vector<1x1x16xf32>
    tpu.vector_store %arg10[%c0_51, %c0_52, %c0_53], %116 {strides = array<i32>} : memref<1x1x16xf32, #tpu.memory_space<vmem>>, vector<1x1x16xf32>,
    return
  }
  func.func @transform_0(%arg0: i32, %arg1: i32) -> (i32, i32, i32) {
    %c0_i32 = arith.constant 0 : i32
    %c0_i32_0 = arith.constant 0 : i32
    return %arg0, %arg1, %c0_i32 : i32, i32, i32
  }
  func.func @transform_1(%arg0: i32, %arg1: i32) -> (i32, i32, i32) {
    %c0_i32 = arith.constant 0 : i32
    %c0_i32_0 = arith.constant 0 : i32
    %c0_i32_1 = arith.constant 0 : i32
    return %arg0, %c0_i32, %c0_i32_0 : i32, i32, i32
  }
  func.func @transform_2(%arg0: i32, %arg1: i32) -> (i32, i32) {
    %c0_i32 = arith.constant 0 : i32
    %c0_i32_0 = arith.constant 0 : i32
    %c0_i32_1 = arith.constant 0 : i32
    return %c0_i32, %c0_i32_0 : i32, i32
  }
  func.func @transform_3(%arg0: i32, %arg1: i32) -> (i32, i32) {
    %c0_i32 = arith.constant 0 : i32
    %c0_i32_0 = arith.constant 0 : i32
    %c0_i32_1 = arith.constant 0 : i32
    return %c0_i32, %c0_i32_0 : i32, i32
  }
  func.func @transform_4(%arg0: i32, %arg1: i32) -> (i32, i32) {
    %c0_i32 = arith.constant 0 : i32
    %c0_i32_0 = arith.constant 0 : i32
    %c0_i32_1 = arith.constant 0 : i32
    return %c0_i32, %c0_i32_0 : i32, i32
  }
  func.func @transform_5(%arg0: i32, %arg1: i32) -> (i32, i32) {
    %c0_i32 = arith.constant 0 : i32
    %c0_i32_0 = arith.constant 0 : i32
    %c0_i32_1 = arith.constant 0 : i32
    return %c0_i32, %c0_i32_0 : i32, i32
  }
  func.func @transform_6(%arg0: i32, %arg1: i32) -> (i32, i32) {
    %c0_i32 = arith.constant 0 : i32
    %c0_i32_0 = arith.constant 0 : i32
    %c0_i32_1 = arith.constant 0 : i32
    return %c0_i32, %c0_i32_0 : i32, i32
  }
  func.func @transform_7(%arg0: i32, %arg1: i32) -> (i32, i32) {
    %c0_i32 = arith.constant 0 : i32
    %c0_i32_0 = arith.constant 0 : i32
    %c0_i32_1 = arith.constant 0 : i32
    return %c0_i32, %c0_i32_0 : i32, i32
  }
  func.func @transform_8(%arg0: i32, %arg1: i32) -> (i32, i32, i32) {
    %c0_i32 = arith.constant 0 : i32
    %c0_i32_0 = arith.constant 0 : i32
    return %arg0, %c0_i32, %arg1 : i32, i32, i32
  }
}

</mosaic_0001>

<bundles_post_ra>
// kernel: tpu_custom_call.1
= control target key start
LH: loop header
LB: loop body
LE: loop exit
PB: predicated region body
PF: predicated region fallthrough
CT: control target
= control target key end

     0   :  { %s1581_s0 = inlined_call_operand.vmem [shape: f32[2,16,32], index: 0, kind: input, shape index: {}]   ;;  %s1582_s1 = inlined_call_operand.hbm [shape: f32[2,2,32], index: 1, kind: input, shape index: {}]   ;;  %s1583_s2 = inlined_call_operand.vmem [shape: f32[1,32], index: 2, kind: input, shape index: {}]   ;;  %s1584_s3 = inlined_call_operand.vmem [shape: f32[1,32], index: 3, kind: input, shape index: {}]   ;;  %s1585_s4 = inlined_call_operand.vmem [shape: f32[32,16], index: 4, kind: input, shape index: {}]   ;;  %s1586_s5 = inlined_call_operand.vmem [shape: f32[16,16], index: 5, kind: input, shape index: {}]   ;;  %s1587_s6 = inlined_call_operand.hbm [shape: f32[16,16], index: 6, kind: input, shape index: {}]   ;;  %s1588_s7 = inlined_call_operand.vmem [shape: f32[1,16], index: 7, kind: input, shape index: {}]   ;;  %s1589_s8 = inlined_call_operand.hbm [shape: f32[2,1,16], index: 8, kind: output, shape index: {}]  }
   0x1   :  { %1595 = sst [smem:[#allocation15_spill]] %s1587_s6 }
   0x2   :  { %13 = vsyncpa [#allocation3], 0 }
   0x3   :  { %15 = vsyncpa [#allocation3 + $0x1], 0 }
   0x4   :  { %16 = vsyncpa [#allocation6], 0 }
   0x5   :  { %17 = vsyncpa [#allocation4], 0 }
   0x6   :  { %19 = vsyncpa [#allocation4 + $0x1], 0  ;;  %s1365_s27 = smov 0   ;;  %s1367_s28 = smov 0  }
   0x7   :  { %s1369_s29 = smov 0   ;;  %s1371_s30 = smov 0  }
   0x8   :  { %s1373_s9 = smov 0   ;;  %s1375_s10 = smov 0  }
   0x9 LB: > { %1596 = sst [smem:[#allocation11_spill]] %s1291_s27  ;;  %s997_s11 = sadd.s32 4294967295, %s1311_s10   ;;  %s1311_s10 = sphi %s1375_s10, %s25_s10   ;;  %s1307_s9 = sphi %s1373_s9, %s1616_s9   ;;  %s1303_s30 = sphi %s1371_s30, %s1615_s30   ;;  %s1299_s29 = sphi %s1369_s29, %s1619_s29   ;;  %s1295_s28 = sphi %s1367_s28, %s1618_s28   ;;  %s1291_s27 = sphi %s1365_s27, %s1617_s27  }
   0xa   : > { %1597 = sst [smem:[#allocation12_spill]] %s1307_s9  ;;  %s998_s12 = sadd.s32 4294967294, %s1311_s10  }
   0xb   : > { %p85_p0 = scmp.ne.s32.totalorder %s1295_s28, %s1291_s27  ;;  %p1399_p1 = scmp.eq.s32.totalorder %s997_s11, 0 }
   0xc   : > { %p1403_p2 = scmp.eq.s32.totalorder %s997_s11, 1  ;;  %p243_p3 = scmp.eq.s32.totalorder %s998_s12, 1 }
   0xd   : > { %p1409_p4 = por %p1399_p1, %p85_p0  ;;  %p999_p5 = scmp.ge.s32.totalorder %s1311_s10, 1 }
   0xe   : > { %p1414_p6 = por %p243_p3, %p85_p0  ;;  %p250_p7 = scmp.lt.s32.totalorder %s1311_s10, 3 }
   0xf   : > { %s1600_s15 = scalar_select %p1409_p4, 1, 0 }
  0x10   : > { %s1601_s16 = scalar_select %p1414_p6, 1, 0 }
  0x11   : > { %p1419_p8 = pnand %p999_p5, %p250_p7  ;;  %s1313_s18 = smov [#allocation5]  }
  0x12   : > { %1602 = sst [smem:[#allocation13_spill]] %s1601_s16  ;;  %s274_s19 = sshll.u32 %s1313_s18, 4  ;;  %s275_s19 = int_to_ptr.vmem [resolvable:$true] %s274_s19 }
  0x13   : > { %p1084_p9 = pneg %p1419_p8  ;;  %s37_s21 = sadd.s32 1, %s1307_s9 }
  0x14   : > { %s1184_s22 = scalar_lea.vmem %s275_s19, 256  ;;  %p1192_p5 = scmp.lt.s32.totalorder %s275_s19, %s275_s19 }
  0x15   : > { %p1428_p11 = pnand %p1084_p9, %p1399_p1  ;;  %p1185_p13 = scmp.ne.s32.totalorder %s275_s19, %s1184_s22 }
  0x16   : > { %p1193_p7 = scmp.lt.s32.totalorder %s1184_s22, %s1184_s22 }
  0x17   : > { %p1175_p12 = pneg %p1428_p11 }
  0x18   : > { %p1194_p6 = por %p1193_p7, %p1192_p5 }
  0x19   : > { %p1187_p0 = pnand %p1185_p13, %p1175_p12 }
  0x1b   : > { %p1188_p3 = pneg %p1187_p0 }
  0x1d   : > { %p1195_p4 = pnand %p1194_p6, %p1188_p3 }
  0x1f   : > { %1198 = shalt.err (!%p1195_p4)
}
  0x20   : > { %s1314_s23 = smov 128   ;;  %s1315_s24 = smov 8  }
  0x21   : > { %s1605_s6 = sld [smem:[#allocation15_spill]]  ;;  %p39_p6 = scmp.ge.s32.totalorder %s37_s21, 2 }
  0x22   : > { %s72_s11 = sadd.s32 1, %s1299_s29  ;;  %p79_p4 = scmp.ne.s32.totalorder %s1299_s29, %s1295_s28 }
  0x23   : > { %p80_p9 = scmp.eq.s32.totalorder %s1311_s10, 0  ;;  %s1621_s21 = smov (%p39_p6, %s37_s21), 0 }
  0x24   : > { %1606 = sst [smem:[#allocation14_spill]] %s1621_s21  ;;  %p1452_p13 = por %p1403_p2, %p79_p4 }
  0x25   : > { %p1446_p12 = por %p80_p9, %p79_p4  ;;  %s69_s20 = ssub.s32 %s1307_s9, %s1621_s21 }
  0x26   : > { %p1097_p0 = scmp.lt.s32.totalorder %s1311_s10, 2 }
  0x27   : > { %1087 = dma.hbm_to_vmem [thread:$0]  (!%p1428_p11), %s1605_s6, 256, %s275_s19, [#allocation6], %s1314_s23, %s1314_s23, %s1315_s24  }
  0x28   : > { %p70_p11 = scmp.eq.s32.totalorder %s69_s20, 0  ;;  %s304_s19 = sand.u32 1, %s1299_s29  }
  0x29   : > { %s1002_s22 = sshll.u32 %s304_s19, 1  ;;  %s1003_s24 = sshll.u32 %s1307_s9, 5 }
  0x2a   : > { %s1461_s23 = scalar_select %p70_p11, %s1299_s29, %s72_s11  }
  0x2b   : > { %s313_s6 = scalar_lea.hbm %s1582_s1, %s1003_s24  ;;  %s308_s16 = scalar_lea.vmem [#allocation2], %s1002_s22 }
  0x2c   : > { %s315_s27 = sshll.u32 %s308_s16, 4  ;;  %p1469_p2 = pnand %p1097_p0, %p1446_p12  ;;  %s316_s27 = int_to_ptr.vmem [resolvable:$true] %s315_s27 }
  0x2d   : > { %s305_s21 = scalar_lea.sflag [#allocation3], %s304_s19  ;;  %s1212_s20 = scalar_lea.vmem %s316_s27, 32 }
  0x2e   : > { %p1201_p3 = pneg %p1469_p2  ;;  %p1213_p5 = scmp.ne.s32.totalorder %s316_s27, %s1212_s20 }
  0x2f   : > { %s1316_s11 = smov [#allocation2]  }
  0x30   : > { %p1215_p7 = pnand %p1213_p5, %p1201_p3  ;;  %s1217_s9 = sshll.u32 %s1316_s11, 4  ;;  %s1218_s9 = int_to_ptr.vmem [resolvable:$false] %s1217_s9 }
  0x31   : > { %s1219_s24 = scalar_lea.vmem %s1218_s9, 64  ;;  %p1220_p4 = scmp.lt.s32.totalorder %s316_s27, %s1218_s9 }
  0x32   : > { %p1216_p6 = pneg %p1215_p7  ;;  %p1221_p9 = scmp.lt.s32.totalorder %s1219_s24, %s1212_s20 }
  0x34   : > { %p1222_p11 = por %p1221_p9, %p1220_p4 }
  0x36   : > { %p1223_p10 = pnand %p1222_p11, %p1216_p6 }
  0x38   : > { %1226 = shalt.err (!%p1223_p10)
}
  0x39   : > { %1091 = dma.hbm_to_vmem [thread:$0]  (!%p1469_p2), %s313_s6, 32, %s316_s27, %s305_s21  }
  0x3a   : > { %324 = sbr.rel (%p1419_p8) target bundleno = 1151 (0x47f), region = 52  ;;  %s1480_s16 = sand.u32 (!%p1419_p8), 1, %s1295_s28  }
  0x3b   : > { %s1005_s12 = sshll.u32 (!%p1419_p8), %s1480_s16, 1  ;;  %s327_s19 = scalar_lea.sflag (!%p1419_p8), [#allocation3], %s1480_s16 }
  0x3c   : > { %s330_s22 = scalar_lea.vmem (!%p1419_p8), [#allocation2], %s1005_s12  ;;  %p1610_p12 = scmp.ne.s32.totalorder (!%p1419_p8), %s1600_s15, 0 }
  0x3f   : > { %1278 = dma.done.wait (%p1610_p12), %s327_s19, 32  }
  0x40   : > { %1280 = vsyncadd (%p1610_p12), %s327_s19, 4294967264 }
  0x41   : > { %1282 = dma.done.wait (%p1399_p1), [#allocation6], 256  }
  0x42   : > { %1284 = vsyncadd (%p1399_p1), [#allocation6], 4294967040  ;;  %p376_p8 = scmp.lt.s32.totalorder %s1303_s30, 1  ;;  %vm537_vm0 = vcmask 254976   ;;  %vm387_vm1 = vcmask 261120   ;;  %v436_v21 = vld [vmem:[%s1585_s4 + $0x18] sm:$0xff] }
  0x43   : > { %v536_v0 = vld [vmem:[%s330_s22] sm:$0x3]  ;;  %v1317_v22 = vmov 0.0   ;;  %v435_v23 = vld [vmem:[%s1585_s4 + $0x10] sm:$0xff]  ;;  %1040 = vmatprep.subr.mxu0 %v436_v21  ;;  %v434_v24 = vld [vmem:[%s1585_s4 + $0x8] sm:$0xff]  ;;  %vm1318_vm2 = vmmov 0  }
  0x44   : > { %s377_s6 = scalar_select %p376_p8, %s1303_s30, 1  ;;  %v538_v3 = vsel %vm537_vm0, %v536_v0, 0.0  ;;  %1051 = vmatprep.subr.mxu1 %v1317_v22  ;;  %1041 = vmatpush3.msra.mxu0 %v436_v21  ;;  %v433_v25 = vld [vmem:[%s1585_s4] sm:$0xff]  ;;  %v646_v49 = vld [vmem:[%s1586_s5 + $0x8] sm:$0xff]  ;;  %vm635_vm3 = vcmask 123904   ;;  %vm649_vm4 = vcmask 130048  }
  0x45   : > { %539 = vadd.xlane.f32.xlu0 %v538_v3  ;;  %1052 = vmatpush3.msra.mxu1 %v436_v21  ;;  %v1009_v36 = vld [vmem:[%s1583_s2] ss:$0 sm:$0xff]  ;;  %v648_v51 = vld [vmem:[#allocation5 + $0x8] sm:$0xff]  ;;  %v647_v52 = vld [vmem:[#allocation5] sm:$0xff]  ;;  %s1018_s25 = sshll.u32 %s1303_s30, 4  ;;  %s374_s26 = scalar_lea.vmem [#allocation7], %s1480_s16 }
  0x46   : > { %s1021_s27 = sshll.u32 %s377_s6, 4  ;;  %1053 = vmatprep.subr.mxu1 %v1317_v22  ;;  %1042 = vmatprep.subr.mxu0 %v435_v23  ;;  %v1010_v38 = vld [vmem:[%s1584_s3] ss:$0 sm:$0xff]  ;;  %s894_s14 = sshll.u32 %s374_s26, 4  ;;  %vm878_vm5 = vcmask 122880   ;;  %s895_s14 = int_to_ptr.vmem [resolvable:$true] %s894_s14 }
  0x47   : > { %s383_s21 = scalar_lea.vmem %s1581_s0, %s1021_s27  ;;  %1054 = vmatpush3.msra.mxu1 %v435_v23  ;;  %1059 = vmatprep.mubr.msk.f32.mxu1 %vm1318_vm2, %v1317_v22  ;;  %v645_v50 = vld [vmem:[%s1586_s5] sm:$0xff]  ;;  %s892_s24 = scalar_lea.hbm %s1589_s8, %s1018_s25 }
  0x48   : > { %v386_v1 = vld [vmem:[%s383_s21 + $0x8] sm:$0xff]  ;;  %v385_v2 = vld [vmem:[%s383_s21] sm:$0xff]  ;;  %1055 = vmatprep.subr.mxu1 %v1317_v22  ;;  %1043 = vmatpush3.msra.mxu0 %v435_v23  ;;  %s881_s12 = scalar_lea.sflag [#allocation4], %s1480_s16  ;;  %s1227_s19 = scalar_lea.vmem %s895_s14, 16 }
  0x49   : > { %v391_v4 = vsel %vm387_vm1, %v386_v1, 0.0  ;;  %v388_v5 = vsel %vm387_vm1, %v385_v2, 0.0  ;;  %1056 = vmatpush3.msra.mxu1 %v434_v24  ;;  %1044 = vmatprep.subr.mxu0 %v434_v24  ;;  %p1228_p1 = scmp.ne.s32.totalorder %s895_s14, %s1227_s19  ;;  %s1319_s22 = smov [#allocation7]  }
  0x4a   : > { %392 = vadd.xlane.f32.xlu1 %v391_v4  ;;  %389 = vadd.xlane.f32.xlu0 %v388_v5  ;;  %s1231_s6 = sshll.u32 %s1319_s22, 4  ;;  %s1232_s6 = int_to_ptr.vmem [resolvable:$false] %s1231_s6 }
  0x4b   : > { %1057 = vmatprep.subr.mxu1 %v1317_v22  ;;  %1045 = vmatpush3.msra.mxu0 %v434_v24  ;;  %p1229_p10 = pnand %p1228_p1, %p1452_p13  ;;  %s1233_s30 = scalar_lea.vmem %s1232_s6, 32 }
  0x4c   : > { %1058 = vmatpush3.msra.mxu1 %v433_v25  ;;  %1046 = vmatprep.subr.mxu0 %v433_v25  ;;  %p1234_p2 = scmp.lt.s32.totalorder %s895_s14, %s1232_s6  ;;  %p1235_p3 = scmp.lt.s32.totalorder %s1233_s30, %s1227_s19 }
  0x4d   : > { %1047 = vmatpush3.msra.mxu0 %v433_v25  ;;  %1069 = vmatprep.subr.mxu1 %v646_v49  ;;  %p1230_p0 = pneg %p1229_p10 }
  0x4e   : > { %1062 = vmatprep.subr.mxu0 %v1317_v22  ;;  %p1236_p5 = por %p1235_p3, %p1234_p2 }
  0x50   : > { %p1237_p7 = pnand %p1236_p5, %p1230_p0 }
  0xce   : > { %v540_v6 = vpop.xlane.xlu0 %539 }
  0xcf   : > { %v541_v8 = vmul.f32 0.03125, %v540_v6 }
  0xd1   : > { %v542_v10 = vsub.f32 %v536_v0, %v541_v8 }
  0xd3   : > { %v393_v7 = vpop.xlane.xlu1 %392  ;;  %v390_v12 = vpop.xlane.xlu0 %389  ;;  %v543_v14 = vmul.f32 %v542_v10, %v542_v10 }
  0xd4   : > { %v396_v9 = vmul.f32 0.03125, %v393_v7  ;;  %v395_v13 = vmul.f32 0.03125, %v390_v12 }
  0xd5   : > { %v544_v17 = vsel %vm537_vm0, %v543_v14, 0.0 }
  0xd6   : > { %v398_v11 = vsub.f32 %v386_v1, %v396_v9  ;;  %v397_v16 = vsub.f32 %v385_v2, %v395_v13  ;;  %545 = vadd.xlane.f32.xlu1 %v544_v17 }
  0xd8   : > { %v400_v15 = vmul.f32 %v398_v11, %v398_v11  ;;  %v399_v19 = vmul.f32 %v397_v16, %v397_v16 }
  0xda   : > { %v404_v18 = vsel %vm387_vm1, %v400_v15, 0.0  ;;  %v401_v20 = vsel %vm387_vm1, %v399_v19, 0.0 }
  0xdb   : > { %405 = vadd.xlane.f32.xlu1 %v404_v18  ;;  %402 = vadd.xlane.f32.xlu0 %v401_v20 }
 0x15f   : > { %v546_v26 = vpop.xlane.xlu1 %545 }
 0x160   : > { %v547_v27 = vmul.f32 0.03125, %v546_v26 }
 0x162   : > { %v548_v28 = vadd.f32 1e-05, %v547_v27 }
 0x164   : > { %v406_v29 = vpop.xlane.xlu1 %405  ;;  %v403_v30 = vpop.xlane.xlu0 %402  ;;  %1153 = vrsqrt.f32 %v548_v28  ;;  %v723_v28 = vlaneseq }
 0x165   : > { %v408_v31 = vmul.f32 0.03125, %v406_v29  ;;  %v407_v32 = vmul.f32 0.03125, %v403_v30 }
 0x166   : > { %v724_v29 = vshrl.u32 %v723_v28, 7 }
 0x167   : > { %v410_v33 = vadd.f32 1e-05, %v408_v31  ;;  %v409_v34 = vadd.f32 1e-05, %v407_v32 }
 0x168   : > { %v725_v30 = vsub.s32 0, %v724_v29 }
 0x169   : > { %1155 = vrsqrt.f32 %v410_v33 }
 0x16a   : > { %1157 = vrsqrt.f32 %v409_v34 }
 0x171   : > { %v1154_v35 = vpop.eup %1153 }
 0x172   : > { %v550_v37 = vmul.f32 %v1154_v35, %v542_v10 }
 0x174   : > { %v551_v39 = vmul.f32 %v1009_v36, %v550_v37 }
 0x176   : > { %v1156_v40 = vpop.eup %1155  ;;  %v552_v42 = vadd.f32 %v1010_v38, %v551_v39 }
 0x177   : > { %v1158_v41 = vpop.eup %1157  ;;  %v414_v43 = vmul.f32 %v1156_v40, %v398_v11 }
 0x178   : > { %v413_v44 = vmul.f32 %v1158_v41, %v397_v16  ;;  %1060 = vmatmul.mubr.msk.f32.vlgmr.msra.gmra.mxu1 %vm387_vm1, %v552_v42 }
 0x179   : > { %v423_v45 = vmul.f32 %v1009_v36, %v414_v43  ;;  %1070 = vmatpush3.msra.mxu1 %v646_v49 }
 0x17a   : > { %v422_v46 = vmul.f32 %v1009_v36, %v413_v44  ;;  %1071 = vmatprep.subr.mxu1 %v645_v50 }
 0x17b   : > { %v432_v47 = vadd.f32 %v1010_v38, %v423_v45  ;;  %1072 = vmatpush3.msra.mxu1 %v645_v50 }
 0x17c   : > { %v431_v48 = vadd.f32 %v1010_v38, %v422_v46 }
 0x17e   : > { %1048 = vmatprep.mubr.msk.f32.mxu0 %vm387_vm1, %v431_v48 }
 0x17f   : > { %1049 = vmatmul.mubr.msk.f32.vlgmr.msra.gmra.mxu0 %vm387_vm1, %v432_v47 }
 0x180   : > { %1066 = vmatprep.mubr.msk.f32.mxu0 %vm1318_vm2, %v1317_v22  ;;  %1063 = vmatpush3.msra.mxu0 %v648_v51 }
 0x181   : > { %1064 = vmatprep.subr.mxu0 %v1317_v22 }
 0x182   : > { %1065 = vmatpush3.msra.mxu0 %v647_v52  ;;  %v1017_v52 = vld [vmem:[%s1588_s7] ss:$0 sm:$0xff] }
 0x238   : > { %v622_v53 = vpop.f32.mrf.mxu1 }
 0x239   : > { %v627_v54 = vmul.f32 0.044715, %v622_v53  ;;  %v626_v9 = vmul.f32 0.5, %v622_v53 }
 0x23a   : > { %v1061_v55 = vpop.f32.mrf.mxu1 }
 0x23b   : > { %v628_v56 = vmul.f32 %v627_v54, %v622_v53 }
 0x23d   : > { %v629_v57 = vmul.f32 %v628_v56, %v622_v53 }
 0x23f   : > { %v1050_v58 = vpop.f32.mrf.mxu0  ;;  %v630_v59 = vadd.f32 %v629_v57, %v622_v53 }
 0x240   : > { %v521_v60 = vmul.f32 0.044715, %v1050_v58  ;;  %v519_v21 = vmul.f32 0.5, %v1050_v58 }
 0x241   : > { %v509_v61 = vpop.f32.mrf.mxu0  ;;  %v631_v62 = vmul.f32 0.7978846, %v630_v59 }
 0x242   : > { %v523_v63 = vmul.f32 %v1050_v58, %v521_v60  ;;  %v520_v0 = vmul.f32 0.044715, %v509_v61  ;;  %v518_v18 = vmul.f32 0.5, %v509_v61 }
 0x243   : > { %1159 = vtanh.f32 %v631_v62 }
 0x244   : > { %v525_v1 = vmul.f32 %v1050_v58, %v523_v63  ;;  %v522_v2 = vmul.f32 %v520_v0, %v509_v61 }
 0x246   : > { %v527_v3 = vadd.f32 %v1050_v58, %v525_v1  ;;  %v524_v4 = vmul.f32 %v522_v2, %v509_v61 }
 0x248   : > { %v529_v5 = vmul.f32 0.7978846, %v527_v3  ;;  %v526_v6 = vadd.f32 %v524_v4, %v509_v61 }
 0x24a   : > { %1161 = vtanh.f32 %v529_v5  ;;  %v528_v7 = vmul.f32 0.7978846, %v526_v6 }
 0x24c   : > { %1163 = vtanh.f32 %v528_v7 }
 0x250   : > { %v1160_v8 = vpop.eup %1159 }
 0x251   : > { %v633_v10 = vadd.f32 1.0, %v1160_v8 }
 0x253   : > { %v634_v11 = vmul.f32 %v633_v10, %v626_v9 }
 0x255   : > { %v636_v12 = vsel %vm635_vm3, %v634_v11, 0.0 }
 0x256   : > { %v637_v14 = vrot.slane %v636_v12, 4 }
 0x257   : > { %v1162_v13 = vpop.eup %1161 }
 0x258   : > { %v638_v16 = vadd.f32 %v637_v14, %v636_v12  ;;  %v533_v17 = vadd.f32 1.0, %v1162_v13 }
 0x259   : > { %v1164_v15 = vpop.eup %1163 }
 0x25a   : > { %v532_v19 = vadd.f32 1.0, %v1164_v15  ;;  %v639_v20 = vrot.slane %v638_v16, 2  ;;  %v535_v23 = vmul.f32 %v533_v17, %v519_v21 }
 0x25c   : > { %v534_v22 = vmul.f32 %v532_v19, %v518_v18  ;;  %v640_v24 = vadd.f32 %v639_v20, %v638_v16 }
 0x25e   : > { %1073 = vmatprep.mubr.msk.f32.mxu1 %vm649_vm4, %v534_v22  ;;  %v641_v25 = vrot.slane %v640_v24, 1 }
 0x25f   : > { %1074 = vmatmul.mubr.msk.f32.vlgmr.msra.gmra.mxu1 %vm649_vm4, %v535_v23 }
 0x260   : > { %v642_v26 = vadd.f32 %v641_v25, %v640_v24 }
 0x262   : > { %v644_v27 = vmul.f32 0.5, %v642_v26 }
 0x264   : > { %1067 = vmatmul.mubr.msk.f32.vlgmr.msra.gmra.mxu0 %vm649_vm4, %v644_v27 }
 0x31f   : > { %v1075_v31 = vpop.f32.mrf.mxu1 }
 0x321   : > { %v799_v34 = vpop.f32.mrf.mxu1 }
 0x324   : > { %v719_v32 = vpop.f32.mrf.mxu0 }
 0x325   : > { %v726_v33 = vrot.slane %v719_v32, %v725_v30 }
 0x326   : > { %v1068_v35 = vpop.f32.mrf.mxu0 }
 0x327   : > { %v800_v36 = vadd.f32 %v799_v34, %v726_v33  ;;  %v805_v37 = vadd.f32 %v1075_v31, %v726_v33 }
 0x329   : > { %v810_v38 = vmul.f32 0.044715, %v800_v36  ;;  %v811_v39 = vmul.f32 0.044715, %v805_v37  ;;  %v809_v50 = vmul.f32 0.5, %v805_v37  ;;  %v808_v53 = vmul.f32 0.5, %v800_v36 }
 0x32b   : > { %v813_v40 = vmul.f32 %v811_v39, %v805_v37  ;;  %v812_v41 = vmul.f32 %v810_v38, %v800_v36 }
 0x32d   : > { %v815_v42 = vmul.f32 %v813_v40, %v805_v37  ;;  %v814_v43 = vmul.f32 %v812_v41, %v800_v36 }
 0x32f   : > { %v817_v44 = vadd.f32 %v815_v42, %v805_v37  ;;  %v816_v45 = vadd.f32 %v814_v43, %v800_v36 }
 0x331   : > { %v819_v46 = vmul.f32 0.7978846, %v817_v44  ;;  %v818_v47 = vmul.f32 0.7978846, %v816_v45 }
 0x333   : > { %1165 = vtanh.f32 %v819_v46 }
 0x334   : > { %1167 = vtanh.f32 %v818_v47 }
 0x340   : > { %v1166_v48 = vpop.eup %1165 }
 0x341   : > { %v1168_v49 = vpop.eup %1167  ;;  %v823_v51 = vadd.f32 1.0, %v1166_v48 }
 0x342   : > { %v822_v54 = vadd.f32 1.0, %v1168_v49 }
 0x343   : > { %v825_v55 = vmul.f32 %v823_v51, %v809_v50 }
 0x344   : > { %v824_v56 = vmul.f32 %v822_v54, %v808_v53 }
 0x345   : > { %v834_v57 = vmul.f32 %v1017_v52, %v825_v55 }
 0x346   : > { %v833_v58 = vmul.f32 %v1017_v52, %v824_v56 }
 0x347   : > { %v838_v59 = vsel %vm649_vm4, %v834_v57, 0.0 }
 0x348   : > { %839 = vadd.xlane.f32.xlu1 %v838_v59  ;;  %v835_v60 = vsel %vm649_vm4, %v833_v58, 0.0 }
 0x349   : > { %836 = vadd.xlane.f32.xlu0 %v835_v60 }
 0x3d1   : > { %v840_v62 = vpop.xlane.xlu1 %839 }
 0x3d2   : > { %v837_v61 = vpop.xlane.xlu0 %836 }
 0x3d3   : > { %841 = vxpose.xlu0.b32.start [1/2] (short) (narrow) %v837_v61, 8 }
 0x3d7   : > { %842 = vxpose.xlu0.b32.end [2/2] (short) (narrow) %v840_v62, 8 }
 0x44f   : > { %v857_v63 = vpop.trf.xlu0 }
 0x450   : > { %v873_v0 = vsub.f32 %v857_v63, %v857_v63 }
 0x452   : > { %v874_v1 = vmul.f32 1.442695, %v873_v0 }
 0x454   : > { %1169 = vpow2.f32 %v874_v1 }
 0x461   : > { %v1170_v2 = vpop.eup %1169 }
 0x462   : > { %1171 = vrcp.f32 %v1170_v2 }
 0x46f   : > { %v1172_v3 = vpop.eup %1171 }
 0x470   : > { %v877_v4 = vmul.f32 %v1172_v3, %v1170_v2 }
 0x472   : > { %879 = vst.msk [vmem:[%s374_s26] sm:$0x1] %vm878_vm5, %v877_v4 }
 0x473   : > { %1240 = shalt.err (!%p1237_p7)
}
 0x474   : > { %s1241_s27 = scalar_lea.hbm %s892_s24, 16  ;;  %s1245_s17 = scalar_lea.hbm %s1589_s8, 32 }
 0x475   : > { %p1242_p6 = scmp.ne.s32.totalorder %s892_s24, %s1241_s27  ;;  %p1246_p11 = scmp.lt.s32.totalorder %s892_s24, %s1589_s8 }
 0x476   : > { %p1247_p12 = scmp.lt.s32.totalorder %s1245_s17, %s1241_s27 }
 0x477   : > { %p1243_p4 = pnand %p1242_p6, %p1452_p13 }
 0x478   : > { %p1248_p8 = por %p1247_p12, %p1246_p11 }
 0x479   : > { %p1244_p9 = pneg %p1243_p4 }
 0x47b   : > { %p1249_p1 = pnand %p1248_p8, %p1244_p9 }
 0x47d   : > { %1252 = shalt.err (!%p1249_p1)
}
 0x47e   : > { %1082 = dma.vmem_to_hbm [thread:$0]  (%p1452_p13), %s895_s14, 16, %s892_s24, %s881_s12  }
 0x47f PF: > { %s1611_s15 = sld [smem:[#allocation11_spill]]  ;;  %p1614_p0 = scmp.ge.s32.totalorder %s1311_s10, 2 }
 0x480   : > { %s1612_s25 = sld [smem:[#allocation13_spill]] }
 0x485   : > { %s906_s26 = sand.u32 1, %s1611_s15  }
 0x486   : > { %p1613_p10 = scmp.ne.s32.totalorder %s1612_s25, 0  ;;  %s907_s20 = scalar_lea.sflag [#allocation4], %s906_s26 }
 0x488   : > { %p1093_p2 = pnand %p1614_p0, %p1613_p10 }
 0x48a   : > { %p1094_p3 = pneg %p1093_p2 }
 0x48c   : > { %1286 = dma.done.wait (%p1094_p3), %s907_s20, 16  }
 0x48d   : > { %1288 = vsyncadd (%p1094_p3), %s907_s20, 4294967280  ;;  %s25_s10 = sadd.s32 1, %s1311_s10   ;;  %s1615_s30 = sld [smem:[#allocation12_spill]] }
 0x48e   : > { %p22_p5 = scmp.ge.s32.totalorder %s25_s10, 4   ;;  %s1616_s9 = sld [smem:[#allocation14_spill]] }
 0x48f   : > { %s1617_s27 = smov %s1295_s28  ;;  %s1618_s28 = smov %s1299_s29 }
 0x490   : > { %s1619_s29 = smov %s1461_s23  ;;  %24 = sbr.rel (!%p22_p5) target bundleno = 9 (0x9), region = 104 }
 0x495   :  { %911 = vsyncpa [#allocation3], 1 }
 0x496   :  { %913 = vsyncpa [#allocation3 + $0x1], 1 }
 0x497   :  { %914 = vsyncpa [#allocation6], 1 }
 0x498   :  { %915 = vsyncpa [#allocation4], 1 }
 0x499   :  { %917 = vsyncpa [#allocation4 + $0x1], 1 }

</bundles_post_ra>
